<compile_context>
chip_gen: v7x
topology: tpu7x:2x2x1
jax: 0.10.0
libtpu: 0.0.40
codegen_flags: <defaults>
</compile_context>

<pallas_src>
import functools

import jax
import jax.numpy as jnp
import numpy as np
from jax import lax
from jax.experimental import pallas as pl
from jax.experimental.pallas import tpu as pltpu

_EPS = 1e-5


def _round_up(x, m):
    return (x + m - 1) // m * m


def _seghead_kernel(x_ref, xn_ref, mk_ref, s1_ref, b1_ref, wA_ref, b2_ref,
                    w1_ref, bo_ref, out_ref, *, W, T):
    # x_ref  : (1, Cin_p, T)      current row block, channel-first, spatial flattened
    # xn_ref : (1, Cin_p, T)      next row block (halo source; only its row 0 is used)
    # mk_ref : (1, 4, T)          f32 masks: [first-local-row, col_ok, row_ok, both]
    # wA_ref : (4, 4*Cmid_p, Cin_p) per-tap, phase-stacked convT weights (bf16)
    # w1_ref : (4*Cout_p, 4*Cmid_p) block-diagonal 1x1 head weight (bf16)
    # out_ref: (1, 4*Cout_p, T)   out[0, p*Cout_p+c, m*W+w] = y[c, 2m+di, 2w+dj], p=2di+dj
    s1 = s1_ref[...]                                    # (Cin_p, 1)
    b1 = b1_ref[...]

    # BN1 (folded) + ReLU -- element-wise math stays f32 (v5e has no bf16 VPU).
    a = jnp.maximum(x_ref[0] * s1 + b1, 0.0)            # (Cin_p, T)
    an = jnp.maximum(xn_ref[0] * s1 + b1, 0.0)          # next block (row 0 = halo row)

    mk = mk_ref[0]                                      # (4, T)
    m_first = mk[0:1, :]        # 1 on the first local row (lanes [0, W))
    m_col = mk[1:2, :]          # 1 where column n+1 exists (w  < W-1)
    m_row = mk[2:3, :]          # 1 where row    m+1 exists (global m < H-1)
    m_both = mk[3:4, :]

    # Splice the halo row (next block's row 0) into the first local row, then a
    # single lane rotation by W yields the "x[m+1, n]" map for every row.
    c = a + (an - a) * m_first
    a10p = pltpu.roll(c, shift=T - W, axis=1)           # value at s becomes c[s + W]
    a01 = pltpu.roll(a, shift=T - 1, axis=1) * m_col    # x[m,   n+1]
    a10 = a10p * m_row                                  # x[m+1, n  ]
    a11 = pltpu.roll(a10p, shift=T - 1, axis=1) * m_both  # x[m+1, n+1]

    f32 = jnp.float32
    bf16 = jnp.bfloat16
    # ConvTranspose2d: 4 accumulating MXU dots, all 4 output phases stacked in the
    # rows of wA (no x_aug concat is ever materialized). bf16 in, f32 accumulate.
    p = jnp.dot(wA_ref[0], a.astype(bf16), preferred_element_type=f32)
    p = p + jnp.dot(wA_ref[1], a01.astype(bf16), preferred_element_type=f32)
    p = p + jnp.dot(wA_ref[2], a10.astype(bf16), preferred_element_type=f32)
    p = p + jnp.dot(wA_ref[3], a11.astype(bf16), preferred_element_type=f32)
    z = jnp.maximum(p + b2_ref[...], 0.0)               # BN2 bias (+convT bias) + ReLU

    # 1x1 conv head, all phases at once (block-diagonal weight):
    # single lane-dense, unmasked (4*Cout_p, T) store.
    out = jnp.dot(w1_ref[...], z.astype(bf16), preferred_element_type=f32)
    out_ref[0] = out + bo_ref[...]


def _pick_row_tile(H, W, cin_p, cmid4_p, cout4_p, budget_bytes=8 * 1024 * 1024):
    """Largest row-block Ht (dividing H, lane-dense) whose per-step footprint fits."""
    cands = [ht for ht in range(1, H + 1)
             if H % ht == 0 and ((ht * W) % 128 == 0 or ht == H)]

    def est(ht):
        t = ht * W
        # double-buffered in/out blocks + masks + f32 intermediates (rough estimate)
        return 4 * t * (4 * cin_p + 8 + 2 * cout4_p + 6 * cin_p + 2 * cmid4_p + cout4_p)

    ok = [ht for ht in cands if est(ht) <= budget_bytes]
    if not ok:
        return min(cands)
    multi = [ht for ht in ok if H // ht >= 2]   # prefer >= 2 pipeline steps per image
    return max(multi) if multi else max(ok)


@functools.partial(jax.jit, static_argnames=("outplanes", "phase_major"))
def seghead_forward(x_nchw, params, *, outplanes, phase_major=False):
    """x_nchw: (N, Cin, H, W) f32. Returns (N, Cout, 2H, 2W) f32 (or phase-major)."""
    s1, b1, w_blocks, b2_all, w1_bd, bo_all = params
    N, Cin, H, Wd = x_nchw.shape
    cin_p = s1.shape[0]
    cmid4_p = b2_all.shape[0]
    cout4_p = bo_all.shape[0]
    cout_p = cout4_p // 4
    S = H * Wd

    ht = _pick_row_tile(H, Wd, cin_p, cmid4_p, cout4_p)
    HB = H // ht
    T = ht * Wd

    # Channel padding to full sublanes; the reshape to (Cin_p, H*W) is free.
    x2d = jnp.pad(x_nchw, ((0, 0), (0, cin_p - Cin), (0, 0), (0, 0))).reshape(N, cin_p, S)

    # Precomputed border / halo masks: one (4, T) slab per row block.
    lane = jnp.arange(T, dtype=jnp.int32)
    w_lane = lane % Wd
    m_loc = lane // Wd
    m_first = (m_loc == 0).astype(jnp.float32)
    m_col = (w_lane < Wd - 1).astype(jnp.float32)
    rows = []
    for h in range(HB):
        m_row = ((h * ht + m_loc) < H - 1).astype(jnp.float32)
        rows.append(jnp.stack([m_first, m_col, m_row, m_col * m_row]))
    masks = jnp.stack(rows)                                         # (HB, 4, T)

    flops = N * (8 * cmid4_p * cin_p + 2 * cout4_p * cmid4_p) * S
    bytes_accessed = (N * S * 4 * (2 * cin_p + cout4_p) + HB * 4 * T * 4
                      + w_blocks.size * 2 + w1_bd.size * 2)

    out = pl.pallas_call(
        functools.partial(_seghead_kernel, W=Wd, T=T),
        out_shape=jax.ShapeDtypeStruct((N, cout4_p, S), jnp.float32),
        grid_spec=pltpu.PrefetchScalarGridSpec(
            num_scalar_prefetch=0,
            grid=(N, HB),
            in_specs=[
                pl.BlockSpec((1, cin_p, T), lambda n, h: (n, 0, h)),        # row block
                pl.BlockSpec((1, cin_p, T),                                 # 1-row halo
                             lambda n, h: (n, 0, jnp.minimum(h + 1, HB - 1))),
                pl.BlockSpec((1, 4, T), lambda n, h: (h, 0, 0)),            # masks
                pl.BlockSpec((cin_p, 1), lambda n, h: (0, 0)),              # BN1 scale
                pl.BlockSpec((cin_p, 1), lambda n, h: (0, 0)),              # BN1 bias
                pl.BlockSpec((4, cmid4_p, cin_p), lambda n, h: (0, 0, 0)),  # convT taps
                pl.BlockSpec((cmid4_p, 1), lambda n, h: (0, 0)),            # BN2 bias
                pl.BlockSpec((cout4_p, cmid4_p), lambda n, h: (0, 0)),      # 1x1 head W
                pl.BlockSpec((cout4_p, 1), lambda n, h: (0, 0)),            # head bias
            ],
            out_specs=pl.BlockSpec((1, cout4_p, T), lambda n, h: (n, 0, h)),
        ),
        compiler_params=pltpu.CompilerParams(
            dimension_semantics=("parallel", "parallel"),
            vmem_limit_bytes=32 * 1024 * 1024),
        cost_estimate=pl.CostEstimate(flops=int(flops), transcendentals=0,
                                      bytes_accessed=int(bytes_accessed)),
    )(x2d, x2d, masks, s1, b1, w_blocks, b2_all, w1_bd, bo_all)

    # out[n, p*Cout_p + c, m*W + w] = y[n, c, 2m+di, 2w+dj]   with p = 2*di + dj
    y = out.reshape(N, 2, 2, cout_p, H, Wd)[:, :, :, :outplanes]
    if phase_major:
        return y                                    # (N, di, dj, Cout, H, W): no extra HBM pass
    return jnp.transpose(y, (0, 3, 4, 1, 5, 2)).reshape(N, outplanes, 2 * H, 2 * Wd)


def init_params(key, inplanes, interplanes, outplanes):
    ks = jax.random.split(key, 12)
    raw = dict(
        gamma1=jax.random.uniform(ks[0], (inplanes,), minval=0.5, maxval=1.5),
        beta1=jax.random.normal(ks[1], (inplanes,)) * 0.1,
        mean1=jax.random.normal(ks[2], (inplanes,)) * 0.1,
        var1=jax.random.uniform(ks[3], (inplanes,), minval=0.5, maxval=1.5),
        wt_pt=jax.random.normal(ks[4], (inplanes, interplanes, 3, 3))
        * (1.0 / np.sqrt(inplanes * 9)),
        bias_t=jax.random.normal(ks[5], (interplanes,)) * 0.1,
        gamma2=jax.random.uniform(ks[6], (interplanes,), minval=0.5, maxval=1.5),
        beta2=jax.random.normal(ks[7], (interplanes,)) * 0.1,
        mean2=jax.random.normal(ks[8], (interplanes,)) * 0.1,
        var2=jax.random.uniform(ks[9], (interplanes,), minval=0.5, maxval=1.5),
        w1_pt=jax.random.normal(ks[10], (outplanes, interplanes, 1, 1))
        * (1.0 / np.sqrt(interplanes)),
        bias_o=jax.random.normal(ks[11], (outplanes,)) * 0.1,
    )
    return {k: v.astype(jnp.float32) for k, v in raw.items()}


def fold_params(raw):
    """Fold eval-mode BN, convT bias and BN2 scale into padded kernel operands."""
    Cin = raw["gamma1"].shape[0]
    Cmid = raw["gamma2"].shape[0]
    Cout = raw["bias_o"].shape[0]
    cin_p = _round_up(Cin, 8)
    cmid_p = _round_up(Cmid, 8)
    cout_p = _round_up(Cout, 2)            # 4*cout_p is a multiple of 8

    s1 = raw["gamma1"] / jnp.sqrt(raw["var1"] + _EPS)
    b1 = raw["beta1"] - raw["mean1"] * s1
    s2 = raw["gamma2"] / jnp.sqrt(raw["var2"] + _EPS)
    b2 = raw["beta2"] + (raw["bias_t"] - raw["mean2"]) * s2

    wt = jnp.transpose(raw["wt_pt"], (2, 3, 0, 1))     # (3, 3, Cin, Cmid)

    def tap(kh, kw):
        # (Cmid, Cin) with BN2 per-channel scale folded into the rows.
        return wt[kh, kw].T * s2[:, None]

    def pad2(m):
        return jnp.pad(m, ((0, cmid_p - m.shape[0]), (0, cin_p - m.shape[1])))

    zero = jnp.zeros((Cmid, Cin), jnp.float32)
    # ConvTranspose2d(k=3, s=2, p=1, op=1) phase decomposition (phase p = 2*di + dj):
    #   y[2m,   2n  ] = W(1,1) x[m,n]
    #   y[2m,   2n+1] = W(1,2) x[m,n] + W(1,0) x[m,n+1]
    #   y[2m+1, 2n  ] = W(2,1) x[m,n] + W(0,1) x[m+1,n]
    #   y[2m+1, 2n+1] = W(2,2) x[m,n] + W(2,0) x[m,n+1] + W(0,2) x[m+1,n] + W(0,0) x[m+1,n+1]
    # taps_per_block[b][p]: weight applied to tap b (a, a01, a10, a11) for phase p.
    taps_per_block = [
        [tap(1, 1), tap(1, 2), tap(2, 1), tap(2, 2)],   # a   = x[m,   n  ]
        [zero,      tap(1, 0), zero,      tap(2, 0)],   # a01 = x[m,   n+1]
        [zero,      zero,      tap(0, 1), tap(0, 2)],   # a10 = x[m+1, n  ]
        [zero,      zero,      zero,      tap(0, 0)],   # a11 = x[m+1, n+1]
    ]
    w_blocks = jnp.stack([
        jnp.concatenate([pad2(m) for m in blk], axis=0) for blk in taps_per_block
    ]).astype(jnp.bfloat16)                                      # (4, 4*cmid_p, cin_p)

    b2_all = jnp.tile(jnp.pad(b2, (0, cmid_p - Cmid)), 4)[:, None]       # (4*cmid_p, 1)

    w1 = jnp.pad(raw["w1_pt"][:, :, 0, 0],
                 ((0, cout_p - Cout), (0, cmid_p - Cmid)))               # (cout_p, cmid_p)
    zw = jnp.zeros_like(w1)
    w1_bd = jnp.concatenate([
        jnp.concatenate([w1 if q == p else zw for q in range(4)], axis=1)
        for p in range(4)
    ], axis=0).astype(jnp.bfloat16)                                      # (4*cout_p, 4*cmid_p)
    bo_all = jnp.tile(jnp.pad(raw["bias_o"], (0, cout_p - Cout)), 4)[:, None]

    s1_p = jnp.pad(s1, (0, cin_p - Cin))[:, None].astype(jnp.float32)
    b1_p = jnp.pad(b1, (0, cin_p - Cin))[:, None].astype(jnp.float32)
    return (s1_p, b1_p, w_blocks, b2_all.astype(jnp.float32), w1_bd,
            bo_all.astype(jnp.float32))


def reference_nchw(x, raw):
    """Pure-JAX reference of SegHead.forward (eval-mode BN), NCHW."""
    g1, be1, m1, v1 = raw["gamma1"], raw["beta1"], raw["mean1"], raw["var1"]
    h = jnp.maximum(
        (x - m1[None, :, None, None]) / jnp.sqrt(v1 + _EPS)[None, :, None, None]
        * g1[None, :, None, None] + be1[None, :, None, None], 0.0)
    # ConvTranspose2d(k=3, s=2, p=1, op=1) == dilated conv with flipped/transposed kernel
    w_flip = jnp.transpose(raw["wt_pt"][:, :, ::-1, ::-1], (1, 0, 2, 3))  # (Cmid, Cin, 3, 3)
    y = lax.conv_general_dilated(
        h, w_flip, window_strides=(1, 1), padding=((1, 2), (1, 2)),
        lhs_dilation=(2, 2), rhs_dilation=(1, 1),
        dimension_numbers=("NCHW", "OIHW", "NCHW"),
        precision=lax.Precision.HIGHEST) + raw["bias_t"][None, :, None, None]
    g2, be2, m2, v2 = raw["gamma2"], raw["beta2"], raw["mean2"], raw["var2"]
    z = jnp.maximum(
        (y - m2[None, :, None, None]) / jnp.sqrt(v2 + _EPS)[None, :, None, None]
        * g2[None, :, None, None] + be2[None, :, None, None], 0.0)
    out = jnp.einsum("nchw,oc->nohw", z, raw["w1_pt"][:, :, 0, 0],
                     precision=lax.Precision.HIGHEST)
    return out + raw["bias_o"][None, :, None, None]


if __name__ == "__main__":
    key = jax.random.PRNGKey(0)
    k_x, k_p = jax.random.split(key)

    N, Cin, H, W = 2, 4, 16, 16          # inplanes=4
    Cmid, Cout = 32, 3                   # interplanes=32, outplanes=3

    x = jax.random.normal(k_x, (N, Cin, H, W), dtype=jnp.float32)
    raw = init_params(k_p, Cin, Cmid, Cout)
    params = fold_params(raw)

    out = seghead_forward(x, params, outplanes=Cout)
    out = jax.block_until_ready(out)

    ref = reference_nchw(x, raw)
    assert out.shape == (N, Cout, 2 * H, 2 * W)
    # bf16 MXU inputs with f32 accumulation -> slightly relaxed tolerance.
    np.testing.assert_allclose(np.asarray(out), np.asarray(ref), rtol=3e-2, atol=3e-2)

    print("KERNEL_OK")
</pallas_src>

<mosaic_0001>
module attributes {stable_mosaic.version = 11 : i64} {
  func.func @_seghead_kernel(%arg0: i32, %arg1: i32, %arg2: memref<1x8x128xf32, #tpu.memory_space<vmem>>, %arg3: memref<1x8x128xf32, #tpu.memory_space<vmem>>, %arg4: memref<1x4x128xf32, #tpu.memory_space<vmem>>, %arg5: memref<8x1xf32, #tpu.memory_space<vmem>>, %arg6: memref<8x1xf32, #tpu.memory_space<vmem>>, %arg7: memref<4x128x8xbf16, #tpu.memory_space<vmem>>, %arg8: memref<128x1xf32, #tpu.memory_space<vmem>>, %arg9: memref<16x128xbf16, #tpu.memory_space<vmem>>, %arg10: memref<16x1xf32, #tpu.memory_space<vmem>>, %arg11: memref<1x16x128xf32, #tpu.memory_space<vmem>>) attributes {dimension_semantics = [#tpu.dimension_semantics<parallel>, #tpu.dimension_semantics<parallel>], iteration_bounds = array<i64: 2, 2>, scalar_prefetch = 0 : i64, scratch_operands = 0 : i64, tpu.core_type = #tpu.core_type<tc>, window_params = [{transform_indices = @transform_0, window_bounds = array<i64: 1, 8, 128>}, {transform_indices = @transform_1, window_bounds = array<i64: 1, 8, 128>}, {transform_indices = @transform_2, window_bounds = array<i64: 1, 4, 128>}, {pipeline_mode = #tpu.pipeline_mode<synchronous>, transform_indices = @transform_3, window_bounds = array<i64: 8, 1>}, {pipeline_mode = #tpu.pipeline_mode<synchronous>, transform_indices = @transform_4, window_bounds = array<i64: 8, 1>}, {pipeline_mode = #tpu.pipeline_mode<synchronous>, transform_indices = @transform_5, window_bounds = array<i64: 4, 128, 8>}, {pipeline_mode = #tpu.pipeline_mode<synchronous>, transform_indices = @transform_6, window_bounds = array<i64: 128, 1>}, {pipeline_mode = #tpu.pipeline_mode<synchronous>, transform_indices = @transform_7, window_bounds = array<i64: 16, 128>}, {pipeline_mode = #tpu.pipeline_mode<synchronous>, transform_indices = @transform_8, window_bounds = array<i64: 16, 1>}, {transform_indices = @transform_9, window_bounds = array<i64: 1, 16, 128>}]} {
    %c0 = arith.constant 0 : index
    %c0_0 = arith.constant 0 : index
    %0 = vector.load %arg5[%c0, %c0_0] : memref<8x1xf32, #tpu.memory_space<vmem>>, vector<8x1xf32>
    %c0_1 = arith.constant 0 : index
    %c0_2 = arith.constant 0 : index
    %1 = vector.load %arg6[%c0_1, %c0_2] : memref<8x1xf32, #tpu.memory_space<vmem>>, vector<8x1xf32>
    %c0_3 = arith.constant 0 : index
    %c0_4 = arith.constant 0 : index
    %c0_5 = arith.constant 0 : index
    %2 = vector.load %arg2[%c0_3, %c0_4, %c0_5] : memref<1x8x128xf32, #tpu.memory_space<vmem>>, vector<1x8x128xf32>
    %3 = vector.shape_cast %2 : vector<1x8x128xf32> to vector<8x128xf32>
    %4 = vector.broadcast %0 : vector<8x1xf32> to vector<8x128xf32>
    %5 = arith.mulf %3, %4 : vector<8x128xf32>
    %6 = vector.broadcast %1 : vector<8x1xf32> to vector<8x128xf32>
    %7 = arith.addf %5, %6 : vector<8x128xf32>
    %cst = arith.constant 0.000000e+00 : f32
    %8 = vector.broadcast %cst : f32 to vector<8x128xf32>
    %9 = arith.maximumf %7, %8 : vector<8x128xf32>
    %c0_6 = arith.constant 0 : index
    %c0_7 = arith.constant 0 : index
    %c0_8 = arith.constant 0 : index
    %10 = vector.load %arg3[%c0_6, %c0_7, %c0_8] : memref<1x8x128xf32, #tpu.memory_space<vmem>>, vector<1x8x128xf32>
    %11 = vector.shape_cast %10 : vector<1x8x128xf32> to vector<8x128xf32>
    %12 = vector.broadcast %0 : vector<8x1xf32> to vector<8x128xf32>
    %13 = arith.mulf %11, %12 : vector<8x128xf32>
    %14 = vector.broadcast %1 : vector<8x1xf32> to vector<8x128xf32>
    %15 = arith.addf %13, %14 : vector<8x128xf32>
    %cst_9 = arith.constant 0.000000e+00 : f32
    %16 = vector.broadcast %cst_9 : f32 to vector<8x128xf32>
    %17 = arith.maximumf %15, %16 : vector<8x128xf32>
    %c0_10 = arith.constant 0 : index
    %c0_11 = arith.constant 0 : index
    %c0_12 = arith.constant 0 : index
    %18 = vector.load %arg4[%c0_10, %c0_11, %c0_12] : memref<1x4x128xf32, #tpu.memory_space<vmem>>, vector<1x4x128xf32>
    %19 = vector.shape_cast %18 : vector<1x4x128xf32> to vector<4x128xf32>
    %20 = vector.extract_strided_slice %19 {offsets = [0, 0], sizes = [1, 128], strides = [1, 1]} : vector<4x128xf32> to vector<1x128xf32>
    %21 = vector.extract_strided_slice %19 {offsets = [1, 0], sizes = [1, 128], strides = [1, 1]} : vector<4x128xf32> to vector<1x128xf32>
    %22 = vector.extract_strided_slice %19 {offsets = [2, 0], sizes = [1, 128], strides = [1, 1]} : vector<4x128xf32> to vector<1x128xf32>
    %23 = vector.extract_strided_slice %19 {offsets = [3, 0], sizes = [1, 128], strides = [1, 1]} : vector<4x128xf32> to vector<1x128xf32>
    %24 = arith.subf %17, %9 : vector<8x128xf32>
    %25 = vector.broadcast %20 : vector<1x128xf32> to vector<8x128xf32>
    %26 = arith.mulf %24, %25 : vector<8x128xf32>
    %27 = arith.addf %9, %26 : vector<8x128xf32>
    %c112_i32 = arith.constant 112 : i32
    %28 = tpu.dynamic_rotate %27 by %c112_i32 dim 1 : vector<8x128xf32>, i32 -> vector<8x128xf32>
    %c127_i32 = arith.constant 127 : i32
    %29 = tpu.dynamic_rotate %9 by %c127_i32 dim 1 : vector<8x128xf32>, i32 -> vector<8x128xf32>
    %30 = vector.broadcast %21 : vector<1x128xf32> to vector<8x128xf32>
    %31 = arith.mulf %29, %30 : vector<8x128xf32>
    %32 = vector.broadcast %22 : vector<1x128xf32> to vector<8x128xf32>
    %33 = arith.mulf %28, %32 : vector<8x128xf32>
    %c127_i32_13 = arith.constant 127 : i32
    %34 = tpu.dynamic_rotate %28 by %c127_i32_13 dim 1 : vector<8x128xf32>, i32 -> vector<8x128xf32>
    %35 = vector.broadcast %23 : vector<1x128xf32> to vector<8x128xf32>
    %36 = arith.mulf %34, %35 : vector<8x128xf32>
    %c0_14 = arith.constant 0 : index
    %c0_15 = arith.constant 0 : index
    %c0_16 = arith.constant 0 : index
    %37 = vector.load %arg7[%c0_14, %c0_15, %c0_16] : memref<4x128x8xbf16, #tpu.memory_space<vmem>>, vector<1x128x8xbf16>
    %38 = vector.shape_cast %37 : vector<1x128x8xbf16> to vector<128x8xbf16>
    %39 = arith.truncf %9 : vector<8x128xf32> to vector<8x128xbf16>
    %cst_17 = arith.constant dense<0.000000e+00> : vector<128x128xf32>
    %40 = tpu.matmul %38, %39, %cst_17 {dimension_numbers = #tpu.dot_dimension_numbers<[1], [0], [0], [1], [0, 0, 1, 1], [], []>} : vector<128x8xbf16>, vector<8x128xbf16>, vector<128x128xf32> -> vector<128x128xf32>
    %c1 = arith.constant 1 : index
    %c0_18 = arith.constant 0 : index
    %c0_19 = arith.constant 0 : index
    %41 = vector.load %arg7[%c1, %c0_18, %c0_19] : memref<4x128x8xbf16, #tpu.memory_space<vmem>>, vector<1x128x8xbf16>
    %42 = vector.shape_cast %41 : vector<1x128x8xbf16> to vector<128x8xbf16>
    %43 = arith.truncf %31 : vector<8x128xf32> to vector<8x128xbf16>
    %cst_20 = arith.constant dense<0.000000e+00> : vector<128x128xf32>
    %44 = tpu.matmul %42, %43, %cst_20 {dimension_numbers = #tpu.dot_dimension_numbers<[1], [0], [0], [1], [0, 0, 1, 1], [], []>} : vector<128x8xbf16>, vector<8x128xbf16>, vector<128x128xf32> -> vector<128x128xf32>
    %45 = arith.addf %40, %44 : vector<128x128xf32>
    %c2 = arith.constant 2 : index
    %c0_21 = arith.constant 0 : index
    %c0_22 = arith.constant 0 : index
    %46 = vector.load %arg7[%c2, %c0_21, %c0_22] : memref<4x128x8xbf16, #tpu.memory_space<vmem>>, vector<1x128x8xbf16>
    %47 = vector.shape_cast %46 : vector<1x128x8xbf16> to vector<128x8xbf16>
    %48 = arith.truncf %33 : vector<8x128xf32> to vector<8x128xbf16>
    %cst_23 = arith.constant dense<0.000000e+00> : vector<128x128xf32>
    %49 = tpu.matmul %47, %48, %cst_23 {dimension_numbers = #tpu.dot_dimension_numbers<[1], [0], [0], [1], [0, 0, 1, 1], [], []>} : vector<128x8xbf16>, vector<8x128xbf16>, vector<128x128xf32> -> vector<128x128xf32>
    %50 = arith.addf %45, %49 : vector<128x128xf32>
    %c3 = arith.constant 3 : index
    %c0_24 = arith.constant 0 : index
    %c0_25 = arith.constant 0 : index
    %51 = vector.load %arg7[%c3, %c0_24, %c0_25] : memref<4x128x8xbf16, #tpu.memory_space<vmem>>, vector<1x128x8xbf16>
    %52 = vector.shape_cast %51 : vector<1x128x8xbf16> to vector<128x8xbf16>
    %53 = arith.truncf %36 : vector<8x128xf32> to vector<8x128xbf16>
    %cst_26 = arith.constant dense<0.000000e+00> : vector<128x128xf32>
    %54 = tpu.matmul %52, %53, %cst_26 {dimension_numbers = #tpu.dot_dimension_numbers<[1], [0], [0], [1], [0, 0, 1, 1], [], []>} : vector<128x8xbf16>, vector<8x128xbf16>, vector<128x128xf32> -> vector<128x128xf32>
    %55 = arith.addf %50, %54 : vector<128x128xf32>
    %c0_27 = arith.constant 0 : index
    %c0_28 = arith.constant 0 : index
    %56 = vector.load %arg8[%c0_27, %c0_28] : memref<128x1xf32, #tpu.memory_space<vmem>>, vector<128x1xf32>
    %57 = vector.broadcast %56 : vector<128x1xf32> to vector<128x128xf32>
    %58 = arith.addf %55, %57 : vector<128x128xf32>
    %cst_29 = arith.constant 0.000000e+00 : f32
    %59 = vector.broadcast %cst_29 : f32 to vector<128x128xf32>
    %60 = arith.maximumf %58, %59 : vector<128x128xf32>
    %c0_30 = arith.constant 0 : index
    %c0_31 = arith.constant 0 : index
    %61 = vector.load %arg9[%c0_30, %c0_31] : memref<16x128xbf16, #tpu.memory_space<vmem>>, vector<16x128xbf16>
    %62 = arith.truncf %60 : vector<128x128xf32> to vector<128x128xbf16>
    %cst_32 = arith.constant dense<0.000000e+00> : vector<16x128xf32>
    %63 = tpu.matmul %61, %62, %cst_32 {dimension_numbers = #tpu.dot_dimension_numbers<[1], [0], [0], [1], [0, 0, 1, 1], [], []>} : vector<16x128xbf16>, vector<128x128xbf16>, vector<16x128xf32> -> vector<16x128xf32>
    %c0_33 = arith.constant 0 : index
    %c0_34 = arith.constant 0 : index
    %64 = vector.load %arg10[%c0_33, %c0_34] : memref<16x1xf32, #tpu.memory_space<vmem>>, vector<16x1xf32>
    %65 = vector.broadcast %64 : vector<16x1xf32> to vector<16x128xf32>
    %66 = arith.addf %63, %65 : vector<16x128xf32>
    %c0_35 = arith.constant 0 : index
    %c0_36 = arith.constant 0 : index
    %c0_37 = arith.constant 0 : index
    %67 = vector.load %arg11[%c0_35, %c0_36, %c0_37] : memref<1x16x128xf32, #tpu.memory_space<vmem>>, vector<1x16x128xf32>
    %68 = vector.shape_cast %67 : vector<1x16x128xf32> to vector<16x128xf32>
    %69 = vector.shape_cast %66 : vector<16x128xf32> to vector<1x16x128xf32>
    tpu.vector_store %arg11[%c0_35, %c0_36, %c0_37], %69 {strides = array<i32>} : memref<1x16x128xf32, #tpu.memory_space<vmem>>, vector<1x16x128xf32>,
    return
  }
  func.func @transform_0(%arg0: i32, %arg1: i32) -> (i32, i32, i32) {
    %c0_i32 = arith.constant 0 : i32
    %c0_i32_0 = arith.constant 0 : i32
    return %arg0, %c0_i32, %arg1 : i32, i32, i32
  }
  func.func @transform_1(%arg0: i32, %arg1: i32) -> (i32, i32, i32) {
    %c1_i32 = arith.constant 1 : i32
    %0 = arith.addi %arg1, %c1_i32 : i32
    %c1_i32_0 = arith.constant 1 : i32
    %1 = arith.minsi %0, %c1_i32_0 : i32
    %c0_i32 = arith.constant 0 : i32
    %c0_i32_1 = arith.constant 0 : i32
    return %arg0, %c0_i32, %1 : i32, i32, i32
  }
  func.func @transform_2(%arg0: i32, %arg1: i32) -> (i32, i32, i32) {
    %c0_i32 = arith.constant 0 : i32
    %c0_i32_0 = arith.constant 0 : i32
    %c0_i32_1 = arith.constant 0 : i32
    return %arg1, %c0_i32, %c0_i32_0 : i32, i32, i32
  }
  func.func @transform_3(%arg0: i32, %arg1: i32) -> (i32, i32) {
    %c0_i32 = arith.constant 0 : i32
    %c0_i32_0 = arith.constant 0 : i32
    %c0_i32_1 = arith.constant 0 : i32
    return %c0_i32, %c0_i32_0 : i32, i32
  }
  func.func @transform_4(%arg0: i32, %arg1: i32) -> (i32, i32) {
    %c0_i32 = arith.constant 0 : i32
    %c0_i32_0 = arith.constant 0 : i32
    %c0_i32_1 = arith.constant 0 : i32
    return %c0_i32, %c0_i32_0 : i32, i32
  }
  func.func @transform_5(%arg0: i32, %arg1: i32) -> (i32, i32, i32) {
    %c0_i32 = arith.constant 0 : i32
    %c0_i32_0 = arith.constant 0 : i32
    %c0_i32_1 = arith.constant 0 : i32
    %c0_i32_2 = arith.constant 0 : i32
    return %c0_i32, %c0_i32_0, %c0_i32_1 : i32, i32, i32
  }
  func.func @transform_6(%arg0: i32, %arg1: i32) -> (i32, i32) {
    %c0_i32 = arith.constant 0 : i32
    %c0_i32_0 = arith.constant 0 : i32
    %c0_i32_1 = arith.constant 0 : i32
    return %c0_i32, %c0_i32_0 : i32, i32
  }
  func.func @transform_7(%arg0: i32, %arg1: i32) -> (i32, i32) {
    %c0_i32 = arith.constant 0 : i32
    %c0_i32_0 = arith.constant 0 : i32
    %c0_i32_1 = arith.constant 0 : i32
    return %c0_i32, %c0_i32_0 : i32, i32
  }
  func.func @transform_8(%arg0: i32, %arg1: i32) -> (i32, i32) {
    %c0_i32 = arith.constant 0 : i32
    %c0_i32_0 = arith.constant 0 : i32
    %c0_i32_1 = arith.constant 0 : i32
    return %c0_i32, %c0_i32_0 : i32, i32
  }
  func.func @transform_9(%arg0: i32, %arg1: i32) -> (i32, i32, i32) {
    %c0_i32 = arith.constant 0 : i32
    %c0_i32_0 = arith.constant 0 : i32
    return %arg0, %c0_i32, %arg1 : i32, i32, i32
  }
}

</mosaic_0001>

<bundles_post_ra>
// kernel: seghead_forward.1
= control target key start
LH: loop header
LB: loop body
LE: loop exit
PB: predicated region body
PF: predicated region fallthrough
CT: control target
= control target key end

     0   :  { %s2558_s0 = inlined_call_operand.vmem [shape: f32[2,8,256], index: 0, kind: input, shape index: {}, may-alias: {0,1}]   ;;  %s2559_s1 = inlined_call_operand.vmem [shape: f32[2,8,256], index: 1, kind: input, shape index: {}, may-alias: {0,1}]   ;;  %s2560_s2 = inlined_call_operand.vmem [shape: f32[2,4,128], index: 2, kind: input, shape index: {}]   ;;  %s2561_s3 = inlined_call_operand.vmem [shape: f32[8,1], index: 3, kind: input, shape index: {}]   ;;  %s2562_s4 = inlined_call_operand.vmem [shape: f32[8,1], index: 4, kind: input, shape index: {}]   ;;  %s2563_s5 = inlined_call_operand.vmem [shape: bf16[4,128,8], index: 5, kind: input, shape index: {}]   ;;  %s2564_s6 = inlined_call_operand.vmem [shape: f32[128,1], index: 6, kind: input, shape index: {}]   ;;  %s2565_s7 = inlined_call_operand.hbm [shape: bf16[16,128], index: 7, kind: input, shape index: {}]   ;;  %s2566_s8 = inlined_call_operand.vmem [shape: f32[16,1], index: 8, kind: input, shape index: {}]   ;;  %s2567_s9 = inlined_call_operand.vmem [shape: f32[2,16,256], index: 9, kind: output, shape index: {}]  }
   0x1   :  { %2574 = sst [smem:[#allocation9_spill]] %s2561_s3 }
   0x2   :  { %2575 = sst [smem:[#allocation10_spill]] %s2562_s4 }
   0x3   :  { %2576 = sst [smem:[#allocation11_spill]] %s2565_s7 }
   0x4   :  { %14 = vsyncpa [#allocation3], 0  ;;  %s2183_s30 = smov 0   ;;  %s2185_s10 = smov 0  }
   0x5   :  { %s2187_s11 = smov 0   ;;  %s2189_s12 = smov 0  }
   0x6   :  { %s2191_s13 = smov 0   ;;  %s2193_s14 = smov 0  }
   0x7   :  { %s2195_s15 = smov 0  }
   0x8 LB: > { %2577 = sst [smem:[#allocation6_spill]] %s2119_s14  ;;  %s1605_s16 = sadd.s32 4294967295, %s2123_s15   ;;  %s2123_s15 = sphi %s2195_s15, %s20_s15   ;;  %s2119_s14 = sphi %s2193_s14, %s2592_s14   ;;  %s2115_s13 = sphi %s2191_s13, %s2596_s13   ;;  %s2111_s12 = sphi %s2189_s12, %s2590_s12   ;;  %s2107_s11 = sphi %s2187_s11, %s2595_s11   ;;  %s2103_s10 = sphi %s2185_s10, %s2594_s10   ;;  %s2099_s30 = sphi %s2183_s30, %s2593_s30  }
   0x9   : > { %s29_s17 = sadd.s32 1, %s2115_s13  ;;  %s32_s18 = sadd.s32 1, %s2119_s14 }
   0xa   : > { %p30_p0 = scmp.ge.s32.totalorder %s29_s17, 2  ;;  %s255_s19 = sadd.s32 1, %s2103_s10 }
   0xb   : > { %p265_p1 = scmp.ne.s32.totalorder %s2103_s10, %s2099_s30  ;;  %p266_p2 = scmp.eq.s32.totalorder %s1605_s16, 3 }
   0xc   : > { %s2598_s17 = smov (%p30_p0, %s29_s17), 0  ;;  %s2600_s18 = smov (!%p30_p0, %s32_s18), %s2119_s14 }
   0xd   : > { %2578 = sst [smem:[#allocation7_spill]] %s2598_s17  ;;  %s251_s20 = ssub.s32 %s2115_s13, %s2598_s17 }
   0xe   : > { %p34_p3 = scmp.ge.s32.totalorder %s2600_s18, 2  ;;  %p1607_p4 = scmp.ge.s32.totalorder %s2123_s15, 1 }
   0xf   : > { %p2230_p5 = por %p266_p2, %p265_p1  ;;  %p279_p6 = scmp.lt.s32.totalorder %s2123_s15, 5 }
  0x10   : > { %s2602_s18 = smov (%p34_p3, %s2600_s18), 0  ;;  %p2243_p8 = scmp.eq.s32.totalorder %s1605_s16, 0 }
  0x11   : > { %s2579_s21 = scalar_select %p2230_p5, 1, 0 }
  0x12   : > { %2580 = sst [smem:[#allocation8_spill]] %s2602_s18  ;;  %p2237_p7 = pnand %p1607_p4, %p279_p6 }
  0x13   : > { %s250_s23 = ssub.s32 %s2119_s14, %s2602_s18  ;;  %s2125_s26 = smov [#allocation2]  }
  0x14   : > { %s2581_s22 = scalar_select %p2237_p7, 1, 0 }
  0x15   : > { %s2582_s24 = scalar_select %p2243_p8, 1, 0 }
  0x16   : > { %s252_s25 = sor.u32 %s251_s20, %s250_s23  ;;  %p1932_p9 = pneg %p2237_p7 }
  0x17   : > { %p253_p10 = scmp.eq.s32.totalorder %s252_s25, 0  ;;  %s303_s27 = sshll.u32 %s2125_s26, 4  ;;  %s304_s27 = int_to_ptr.vmem [resolvable:$true] %s303_s27 }
  0x18   : > { %p2251_p11 = pnand %p2243_p8, %p1932_p9  ;;  %s2584_s7 = sld [smem:[#allocation11_spill]] }
  0x19   : > { %s2256_s29 = scalar_select %p253_p10, %s2103_s10, %s255_s19  }
  0x1a   : > { %p2039_p13 = pneg %p2251_p11 }
  0x1e   : > { %s2037_s17 = scalar_lea.hbm %s2584_s7, 128 }
  0x1f   : > { %p2038_p12 = scmp.ne.s32.totalorder %s2584_s7, %s2037_s17  ;;  %p2044_p2 = scmp.lt.u32.totalorder %s2037_s17, %s2584_s7 }
  0x21   : > { %p2040_p0 = pnand %p2039_p13, %p2038_p12 }
  0x23   : > { %p2041_p1 = pneg %p2040_p0 }
  0x25   : > { %p2046_p3 = pnand %p2044_p2, %p2041_p1 }
  0x27   : > { %2049 = shalt.err (!%p2046_p3)
}
  0x28   : > { %s2050_s19 = scalar_lea.vmem %s304_s27, 128  ;;  %p2058_p10 = scmp.lt.s32.totalorder %s304_s27, %s304_s27 }
  0x29   : > { %p2051_p4 = scmp.ne.s32.totalorder %s304_s27, %s2050_s19  ;;  %p2059_p5 = scmp.lt.s32.totalorder %s2050_s19, %s2050_s19 }
  0x2b   : > { %p2053_p6 = pnand %p2051_p4, %p2039_p13  ;;  %p2060_p8 = por %p2059_p5, %p2058_p10 }
  0x2d   : > { %p2054_p9 = pneg %p2053_p6 }
  0x2f   : > { %p2061_p7 = pnand %p2060_p8, %p2054_p9 }
  0x31   : > { %2064 = shalt.err (!%p2061_p7)
}
  0x32   : > { %s2126_s14 = smov 64   ;;  %s2127_s18 = smov 4  }
  0x33   : > { %1935 = dma.hbm_to_vmem [thread:$0]  (!%p2251_p11), %s2584_s7, 128, %s304_s27, [#allocation3], %s2126_s14, %s2126_s14, %s2127_s18  }
  0x34   : > { %p2585_p12 = scmp.ne.s32.totalorder %s2581_s22, 0 }
  0x35   : > { %p2586_p0 = scmp.ne.s32.totalorder (!%p2585_p12), %s2582_s24, 0 }
  0x36   : > { %357 = sbr.rel (%p2585_p12) target bundleno = 928 (0x3a0), region = 56 }
  0x3d   : > { %2094 = dma.done.wait (%p2586_p0), [#allocation3], 128  }
  0x3e   : > { %2096 = vsyncadd (%p2586_p0), [#allocation3], 4294967168  ;;  %v2128_v0 = vmov 0   ;;  %s2587_s3 = sld [smem:[#allocation9_spill]]  ;;  %s2588_s4 = sld [smem:[#allocation10_spill]]  ;;  %v459_v3 = vlaneseq  ;;  %v2004_v20 = vld [vmem:[%s2563_s5 + $0x40] sm:$0xff]  }
  0x3f   : > { %2002 = vset.pattern.permute.xlu0 %v2128_v0  ;;  %2003 = vset.pattern.permute.xlu1 %v2128_v0  ;;  %s418_s24 = sadd.s32 1, %s2107_s11  ;;  %p410_p7 = scmp.lt.s32.totalorder %s2111_s12, 1  ;;  %vm561_vm0 = vcmask 64512   ;;  %v2006_v22 = vld [vmem:[%s2563_s5 + $0x80] sm:$0xff]   ;;  %v1248_v29 = vld [vmem:[%s2564_s6 + $0x8] sm:$0xff]  ;;  %vm586_vm1 = vcmask 1043456  }
  0x40   : > { %p419_p5 = scmp.lt.s32.totalorder %s418_s24, 1  ;;  %p412_p8 = scmp.lt.s32.totalorder %s2107_s11, 1  ;;  %v2297_v4 = vshrl.u32 %v459_v3, 7  ;;  %1786 = vmatprep.mubr.msk.bf16.mxu1 %vm561_vm0, %v2004_v20  ;;  %1822 = vmatprep.mubr.msk.bf16.mxu0 %vm561_vm0, %v2006_v22  ;;  %v1250_v34 = vld [vmem:[%s2564_s6 + $0x18] sm:$0xff]  ;;  %v2008_v35 = vld [vmem:[%s2563_s5 + $0x88] sm:$0xff]   ;;  %v2010_v37 = vld [vmem:[%s2563_s5 + $0x90] sm:$0xff]  }
  0x41   : > { %s411_s20 = scalar_select %p410_p7, %s2111_s12, 1  ;;  %v2005_v40 = vld [vmem:[%s2563_s5 + $0x48] sm:$0xff]   ;;  %v2007_v42 = vld [vmem:[%s2563_s5 + $0x50] sm:$0xff]   ;;  %v1254_v44 = vld [vmem:[%s2564_s6 + $0x38] sm:$0xff]  ;;  %vm2132_vm2 = vmmov 0  }
  0x42   : > { %s2604_s24 = smov (!%p419_p5, %s418_s24), 1  ;;  %v461_v10 = vsub.s32 0, %v2297_v4  ;;  %s2130_s7 = smov 127   ;;  %v476_v23 = vsub.s32 2, %v2297_v4  ;;  %v471_v25 = vsub.s32 1, %v2297_v4  ;;  %v1252_v41 = vld [vmem:[%s2564_s6 + $0x28] sm:$0xff] }
  0x43   : > { %s413_s23 = scalar_select %p412_p8, %s2107_s11, 1  ;;  %v2012_v45 = vld [vmem:[%s2563_s5 + $0x98] sm:$0xff]   ;;  %v2014_v46 = vld [vmem:[%s2563_s5 + $0xa0] sm:$0xff]   ;;  %v1256_v48 = vld [vmem:[%s2564_s6 + $0x48] sm:$0xff] }
  0x44   : > { %v437_v1 = vld [vmem:[%s2587_s3] sm:$0xff]  ;;  %s2606_s24 = smov (!%p419_p5, %s2604_s24), 1  ;;  %s1613_s25 = sshll.u32 %s411_s20, 1  ;;  %v2009_v47 = vld [vmem:[%s2563_s5 + $0x58] sm:$0xff]   ;;  %v2016_v51 = vld [vmem:[%s2563_s5 + $0xa8] sm:$0xff]  }
  0x45   : > { %442 = vperm.xlu0 %2002, %v437_v1   ;;  %v438_v2 = vld [vmem:[%s2588_s4] sm:$0xff]  ;;  %s415_s19 = sadd.s32 %s1613_s25, %s413_s23  ;;  %s426_s14 = sadd.s32 %s1613_s25, %s2606_s24  ;;  %v1258_v50 = vld [vmem:[%s2564_s6 + $0x58] sm:$0xff]  ;;  %v2018_v52 = vld [vmem:[%s2563_s5 + $0xb0] sm:$0xff]  }
  0x46   : > { %s1614_s18 = sshll.u32 %s415_s19, 3  ;;  %s1619_s26 = sshll.u32 %s426_s14, 3  ;;  %v2011_v49 = vld [vmem:[%s2563_s5 + $0x60] sm:$0xff]   ;;  %v2013_v53 = vld [vmem:[%s2563_s5 + $0x68] sm:$0xff]   ;;  %v2015_v55 = vld [vmem:[%s2563_s5 + $0x70] sm:$0xff]  }
  0x47   : > { %s417_s28 = scalar_lea.vmem %s2558_s0, %s1614_s18  ;;  %s428_s3 = scalar_lea.vmem %s2559_s1, %s1619_s26  ;;  %v1260_v54 = vld [vmem:[%s2564_s6 + $0x68] sm:$0xff]  ;;  %v1262_v56 = vld [vmem:[%s2564_s6 + $0x78] sm:$0xff]  ;;  %v2022_v58 = vld [vmem:[%s2563_s5 + $0xc0] sm:$0xff]  }
  0x48   : > { %s1620_s4 = sshll.u32 %s413_s23, 2  ;;  %v439_v5 = vld [vmem:[%s417_s28] sm:$0xff]  ;;  %v2020_v57 = vld [vmem:[%s2563_s5 + $0xb8] sm:$0xff]   ;;  %v1386_v60 = vld [vmem:[%s2566_s8 + $0x8] sm:$0xff]  ;;  %s407_s14 = sand.u32 1, %s2099_s30  }
  0x49   : > { %448 = vperm.xlu0 %2002, %v438_v2   ;;  %v453_v6 = vld [vmem:[%s428_s3] sm:$0xff]  ;;  %s435_s24 = scalar_lea.vmem %s2560_s2, %s1620_s4  ;;  %s2129_s4 = smov 112   ;;  %v2017_v59 = vld [vmem:[%s2563_s5 + $0x78] sm:$0xff]   ;;  %v1249_v63 = vld [vmem:[%s2564_s6 + $0x10] sm:$0xff] }
  0x4a   : > { %v2303_v12 = vld [vmem:[%s435_s24] sm:$0xf]  ;;  %v2021_v0 = vld [vmem:[%s2563_s5 + $0x8] sm:$0xff]   ;;  %v2023_v1 = vld [vmem:[%s2563_s5 + $0x10] sm:$0xff]   ;;  %s1612_s18 = sshll.u32 %s407_s14, 4  ;;  %p2589_p11 = scmp.ne.s32.totalorder %s2579_s21, 0 }
  0x4b   : > { %v462_v17 = vrot.slane %v2303_v12, %v461_v10  ;;  %v477_v24 = vrot.slane %v2303_v12, %v476_v23  ;;  %v472_v28 = vrot.slane %v2303_v12, %v471_v25  ;;  %v2019_v61 = vld [vmem:[%s2563_s5] sm:$0xff]   ;;  %v1253_v3 = vld [vmem:[%s2564_s6 + $0x30] sm:$0xff]  ;;  %v2024_v22 = vld [vmem:[%s2563_s5 + $0xc8] sm:$0xff]   ;;  %s409_s26 = scalar_lea.vmem [#allocation4], %s1612_s18  ;;  %s1735_s16 = sshll.u32 (%p2589_p11), %s2111_s12, 2 }
  0x4c   : > { %v1247_v62 = vld [vmem:[%s2564_s6] sm:$0xff]  ;;  %v2032_v10 = vld [vmem:[%s2563_s5 + $0x30] sm:$0xff]   ;;  %s1454_s17 = sadd.s32 (%p2589_p11), %s2107_s11, %s1735_s16 }
  0x4d   : > { %v1251_v2 = vld [vmem:[%s2564_s6 + $0x20] sm:$0xff]  ;;  %v2026_v23 = vld [vmem:[%s2563_s5 + $0xd0] sm:$0xff]   ;;  %s1736_s30 = sshll.u32 (%p2589_p11), %s1454_s17, 3 }
  0x4e   : > { %v2034_v25 = vld [vmem:[%s2563_s5 + $0xf0] sm:$0xff]   ;;  %s1456_s27 = scalar_lea.vmem (%p2589_p11), %s2567_s9, %s1736_s30 }
  0xc4   : > { %v443_v7 = vpop.permute.xlu0 %442 }
  0xc5   : > { %v445_v8 = vmul.f32 %v443_v7, %v439_v5  ;;  %v454_v9 = vmul.f32 %v453_v6, %v443_v7  ;;  %v2025_v5 = vld [vmem:[%s2563_s5 + $0x18] sm:$0xff]   ;;  %v2028_v6 = vld [vmem:[%s2563_s5 + $0x20] sm:$0xff]  }
  0xc6   : > { %v1255_v7 = vld [vmem:[%s2564_s6 + $0x40] sm:$0xff] }
  0xc8   : > { %v449_v11 = vpop.permute.xlu0 %448 }
  0xc9   : > { %v451_v13 = vadd.f32 %v449_v11, %v445_v8  ;;  %v455_v14 = vadd.f32 %v454_v9, %v449_v11  ;;  %v1257_v8 = vld [vmem:[%s2564_s6 + $0x50] sm:$0xff]  ;;  %v2029_v9 = vld [vmem:[%s2563_s5 + $0x28] sm:$0xff]   ;;  %v1259_v11 = vld [vmem:[%s2564_s6 + $0x60] sm:$0xff] }
  0xcb   : > { %v452_v15 = vmax.f32 %v451_v13, 0.0  ;;  %v456_v16 = vmax.f32 %v455_v14, 0.0  ;;  %v1261_v13 = vld [vmem:[%s2564_s6 + $0x70] sm:$0xff]  ;;  %v2033_v14 = vld [vmem:[%s2563_s5 + $0x38] sm:$0xff]  }
  0xcd   : > { %v458_v18 = vsub.f32 %v456_v16, %v452_v15  ;;  %v502_v39 = vpack.c.bf16 %v452_v15, %v452_v15  ;;  %v483_v16 = vsub.s32 3, %v2297_v4  ;;  %v2027_v4 = vld [vmem:[%s2563_s5 + $0xd8] sm:$0xff]  }
  0xcf   : > { %v463_v19 = vmul.f32 %v462_v17, %v458_v18  ;;  %v752_v43 = vsel %vm586_vm1, %v502_v39, 0  ;;  %v484_v17 = vrot.slane %v2303_v12, %v483_v16  ;;  %v2030_v12 = vld [vmem:[%s2563_s5 + $0xe0] sm:$0xff]  }
  0xd1   : > { %v464_v21 = vadd.f32 %v463_v19, %v452_v15 }
  0xd3   : > { %465 = vrot.lane.b32.xlu1 %v464_v21, %s2129_s4 }
  0xd7   : > { %467 = vrot.lane.b32.xlu1 %v452_v15, %s2130_s7  ;;  %v1385_v15 = vld [vmem:[%s2566_s8] sm:$0xff] }
  0xdb   : > { %1265 = vperm.xlu1 %2003, %v1247_v62  }
  0xdf   : > { %1275 = vperm.xlu1 %2003, %v1249_v63  }
  0xe3   : > { %1285 = vperm.xlu1 %2003, %v1251_v2  }
  0xe7   : > { %1295 = vperm.xlu1 %2003, %v1253_v3  }
  0xeb   : > { %1305 = vperm.xlu1 %2003, %v1255_v7  }
  0xef   : > { %1315 = vperm.xlu1 %2003, %v1257_v8  }
  0xf3   : > { %1325 = vperm.xlu1 %2003, %v1259_v11  }
  0xf7   : > { %1335 = vperm.xlu1 %2003, %v1261_v13  }
  0xfb   : > { %1389 = vperm.xlu1 %2003, %v1385_v15  }
 0x145   : > { %v466_v26 = vpop.permute.xlu1 %465 }
 0x146   : > { %v478_v27 = vmul.f32 %v477_v24, %v466_v26  ;;  %479 = vrot.lane.b32.xlu0 %v466_v26, %s2130_s7  ;;  %v2031_v24 = vld [vmem:[%s2563_s5 + $0xe8] sm:$0xff]   ;;  %v2035_v26 = vld [vmem:[%s2563_s5 + $0xf8] sm:$0xff]  }
 0x148   : > { %v868_v30 = vpack.c.bf16 %v478_v27, %v478_v27  ;;  %v2131_v27 = vmov 0.0  }
 0x149   : > { %v468_v31 = vpop.permute.xlu1 %467 }
 0x14a   : > { %v473_v32 = vmul.f32 %v472_v28, %v468_v31  ;;  %1926 = vmatprep.subr.msk.bf16.mxu0 %vm586_vm1, %v868_v30  ;;  %1270 = vperm.xlu0 %2002, %v1248_v29   ;;  %v934_v33 = vsel %vm586_vm1, %v868_v30, 0 }
 0x14b   : > { %1821 = vmatpush3.bf16.msra.mxu0 %v934_v33 }
 0x14c   : > { %v520_v36 = vpack.c.bf16 %v473_v32, %v473_v32 }
 0x14e   : > { %1280 = vperm.xlu0 %2002, %v1250_v34   ;;  %1924 = vmatprep.subr.msk.bf16.mxu1 %vm586_vm1, %v520_v36  ;;  %v588_v38 = vsel %vm586_vm1, %v520_v36, 0 }
 0x14f   : > { %1785 = vmatpush3.bf16.msra.mxu1 %v588_v38  ;;  %1823 = vmatmul.mubr.msk.bf16.vlgmr.msra.gmra.mrb[0].mxu0 %vm561_vm0, %v2008_v35 }
 0x150   : > { %1925 = vmatprep.subr.msk.bf16.mxu1 %vm586_vm1, %v502_v39  ;;  %1826 = vmatprep.mubr.msk.bf16.mxu0 %vm561_vm0, %v2010_v37 }
 0x152   : > { %1290 = vperm.xlu0 %2002, %v1252_v41   ;;  %1787 = vmatmul.mubr.msk.bf16.vlgmr.msra.gmra.mrb[0].mxu1 %vm561_vm0, %v2005_v40 }
 0x153   : > { %1803 = vmatpush3.bf16.msra.mxu1 %v752_v43  ;;  %1790 = vmatprep.mubr.msk.bf16.mxu1 %vm561_vm0, %v2007_v42 }
 0x154   : > { %1856 = vmatprep.subr.bf16.mxu1 %v2131_v27 }
 0x156   : > { %1300 = vperm.xlu0 %2002, %v1254_v44  }
 0x157   : > { %1827 = vmatmul.mubr.msk.bf16.gmra.mrb[4].mxu0 %vm561_vm0, %v2012_v45 }
 0x158   : > { %1830 = vmatprep.mubr.msk.bf16.mxu0 %vm561_vm0, %v2014_v46 }
 0x15a   : > { %1310 = vperm.xlu0 %2002, %v1256_v48   ;;  %1791 = vmatmul.mubr.msk.bf16.gmra.mrb[4].mxu1 %vm561_vm0, %v2009_v47  ;;  %v1266_v44 = vpop.permute.xlu1 %1265 }
 0x15b   : > { %1794 = vmatprep.mubr.msk.bf16.mxu1 %vm561_vm0, %v2011_v49 }
 0x15e   : > { %1320 = vperm.xlu0 %2002, %v1258_v50   ;;  %v1276_v46 = vpop.permute.xlu1 %1275 }
 0x15f   : > { %1831 = vmatmul.mubr.msk.bf16.gmra.mrb[8].mxu0 %vm561_vm0, %v2016_v51 }
 0x160   : > { %1834 = vmatprep.mubr.msk.bf16.mxu0 %vm561_vm0, %v2018_v52 }
 0x162   : > { %1330 = vperm.xlu0 %2002, %v1260_v54   ;;  %1795 = vmatmul.mubr.msk.bf16.gmra.mrb[8].mxu1 %vm561_vm0, %v2013_v53  ;;  %v1286_v48 = vpop.permute.xlu1 %1285 }
 0x163   : > { %1798 = vmatprep.mubr.msk.bf16.mxu1 %vm561_vm0, %v2015_v55 }
 0x166   : > { %1340 = vperm.xlu0 %2002, %v1262_v56   ;;  %v1296_v55 = vpop.permute.xlu1 %1295 }
 0x167   : > { %1835 = vmatmul.mubr.msk.bf16.gmra.mrb[12].mxu0 %vm561_vm0, %v2020_v57 }
 0x168   : > { %1840 = vmatprep.mubr.msk.bf16.mxu0 %vm561_vm0, %v2022_v58 }
 0x16a   : > { %1394 = vperm.xlu0 %2002, %v1386_v60   ;;  %1799 = vmatmul.mubr.msk.bf16.gmra.mrb[12].mxu1 %vm561_vm0, %v2017_v59 }
 0x16b   : > { %1804 = vmatprep.mubr.msk.bf16.mxu1 %vm561_vm0, %v2019_v61 }
 0x172   : > { %1805 = vmatmul.mubr.msk.bf16.vlgmr.msra.gmra.mrb[0].mxu1 %vm561_vm0, %v2021_v0 }
 0x173   : > { %1808 = vmatprep.mubr.msk.bf16.mxu1 %vm561_vm0, %v2023_v1 }
 0x17a   : > { %1809 = vmatmul.mubr.msk.bf16.gmra.mrb[4].mxu1 %vm561_vm0, %v2025_v5 }
 0x17b   : > { %1812 = vmatprep.mubr.msk.bf16.mxu1 %vm561_vm0, %v2028_v6  ;;  %v1306_v6 = vpop.permute.xlu1 %1305 }
 0x182   : > { %1813 = vmatmul.mubr.msk.bf16.gmra.mrb[8].mxu1 %vm561_vm0, %v2029_v9 }
 0x183   : > { %1816 = vmatprep.mubr.msk.bf16.mxu1 %vm561_vm0, %v2032_v10 }
 0x18a   : > { %1817 = vmatmul.mubr.msk.bf16.gmra.mrb[12].mxu1 %vm561_vm0, %v2033_v14 }
 0x18b   : > { %1872 = vmatprep.mubr.msk.bf16.mxu1 %vm2132_vm2, %v2131_v27 }
 0x1b8   : > { %v480_v18 = vpop.permute.xlu0 %479 }
 0x1b9   : > { %v485_v19 = vmul.f32 %v484_v17, %v480_v18 }
 0x1bb   : > { %v1066_v20 = vpack.c.bf16 %v485_v19, %v485_v19 }
 0x1bd   : > { %v1132_v21 = vsel %vm586_vm1, %v1066_v20, 0  ;;  %1927 = vmatprep.subr.msk.bf16.mxu0 %vm586_vm1, %v1066_v20 }
 0x1be   : > { %1839 = vmatpush3.bf16.msra.mxu0 %v1132_v21 }
 0x1c1   : > { %1841 = vmatmul.mubr.msk.bf16.vlgmr.msra.gmra.mrb[0].mxu0 %vm561_vm0, %v2024_v22  ;;  %v1316_v22 = vpop.permute.xlu1 %1315 }
 0x1c2   : > { %1844 = vmatprep.mubr.msk.bf16.mxu0 %vm561_vm0, %v2026_v23 }
 0x1c9   : > { %1845 = vmatmul.mubr.msk.bf16.gmra.mrb[4].mxu0 %vm561_vm0, %v2027_v4  ;;  %v1271_v45 = vpop.permute.xlu0 %1270 }
 0x1ca   : > { %1848 = vmatprep.mubr.msk.bf16.mxu0 %vm561_vm0, %v2030_v12 }
 0x1cd   : > { %v1281_v47 = vpop.permute.xlu0 %1280 }
 0x1d1   : > { %1849 = vmatmul.mubr.msk.bf16.gmra.mrb[8].mxu0 %vm561_vm0, %v2031_v24  ;;  %v1291_v49 = vpop.permute.xlu0 %1290 }
 0x1d2   : > { %1852 = vmatprep.mubr.msk.bf16.mxu0 %vm561_vm0, %v2034_v25 }
 0x1d5   : > { %v1301_v59 = vpop.permute.xlu0 %1300 }
 0x1d9   : > { %1853 = vmatmul.mubr.msk.bf16.gmra.mrb[12].mxu0 %vm561_vm0, %v2035_v26  ;;  %v1311_v10 = vpop.permute.xlu0 %1310 }
 0x1dd   : > { %v1321_v12 = vpop.permute.xlu0 %1320 }
 0x245   : > { %v1806_v28 = vpop.f32.mrb[0].mxu1 }
 0x246   : > { %v788_v29 = vpop.f32.mrb[1].mxu1 }
 0x247   : > { %v1807_v30 = vpop.f32.mrb[2].mxu1 }
 0x248   : > { %v791_v31 = vpop.f32.mrb[3].mxu1 }
 0x24d   : > { %v1810_v32 = vpop.f32.mrb[4].mxu1 }
 0x24e   : > { %v804_v33 = vpop.f32.mrb[5].mxu1 }
 0x24f   : > { %v1811_v34 = vpop.f32.mrb[6].mxu1 }
 0x250   : > { %v807_v35 = vpop.f32.mrb[7].mxu1 }
 0x255   : > { %v1814_v36 = vpop.f32.mrb[8].mxu1 }
 0x256   : > { %v820_v37 = vpop.f32.mrb[9].mxu1 }
 0x257   : > { %v2504_v38 = vpop.f32.mrb[10].mxu1 }
 0x258   : > { %v2506_v39 = vpop.f32.mrb[11].mxu1 }
 0x25d   : > { %v2508_v40 = vpop.f32.mrb[12].mxu1 }
 0x25e   : > { %v2510_v41 = vpop.f32.mrb[13].mxu1 }
 0x25f   : > { %v2512_v42 = vpop.f32.mrb[14].mxu1 }
 0x260   : > { %v2514_v43 = vpop.f32.mrb[15].mxu1 }
 0x294   : > { %v1842_v50 = vpop.f32.mrb[0].mxu0 }
 0x295   : > { %v1876_v51 = vadd.f32 %v1842_v50, %v1806_v28  ;;  %v1168_v52 = vpop.f32.mrb[1].mxu0 }
 0x296   : > { %v1877_v53 = vadd.f32 %v1168_v52, %v788_v29  ;;  %v1843_v54 = vpop.f32.mrb[2].mxu0 }
 0x297   : > { %v1878_v56 = vadd.f32 %v1843_v54, %v1807_v30  ;;  %v1345_v57 = vadd.f32 %v1876_v51, %v1276_v46  ;;  %v1171_v58 = vpop.f32.mrb[3].mxu0 }
 0x298   : > { %v1343_v60 = vadd.f32 %v1877_v53, %v1266_v44  ;;  %v1879_v61 = vadd.f32 %v1171_v58, %v791_v31 }
 0x299   : > { %v1346_v62 = vadd.f32 %v1878_v56, %v1281_v47  ;;  %v1361_v1 = vmax.f32 %v1345_v57, 0.0  ;;  %v1326_v47 = vpop.permute.xlu1 %1325 }
 0x29a   : > { %v1344_v63 = vadd.f32 %v1879_v61, %v1271_v45  ;;  %v1359_v2 = vmax.f32 %v1343_v60, 0.0 }
 0x29b   : > { %v1362_v0 = vmax.f32 %v1346_v62, 0.0 }
 0x29c   : > { %v1360_v3 = vmax.f32 %v1344_v63, 0.0  ;;  %v1846_v5 = vpop.f32.mrb[4].mxu0 }
 0x29d   : > { %v1378_v7 = vpack.c.bf16 %v1362_v0, %v1361_v1  ;;  %v1880_v8 = vadd.f32 %v1846_v5, %v1810_v32  ;;  %v1184_v9 = vpop.f32.mrb[5].mxu0  ;;  %v1336_v58 = vpop.permute.xlu1 %1335 }
 0x29e   : > { %v1377_v11 = vpack.c.bf16 %v1360_v3, %v1359_v2  ;;  %v1881_v13 = vadd.f32 %v1184_v9, %v804_v33  ;;  %v1847_v14 = vpop.f32.mrb[6].mxu0 }
 0x29f   : > { %v1882_v15 = vadd.f32 %v1847_v14, %v1811_v34  ;;  %v1349_v16 = vadd.f32 %v1880_v8, %v1296_v55  ;;  %v1187_v17 = vpop.f32.mrb[7].mxu0 }
 0x2a0   : > { %v1347_v18 = vadd.f32 %v1881_v13, %v1286_v48  ;;  %v1883_v19 = vadd.f32 %v1187_v17, %v807_v35  ;;  %1857 = vmatpush3.bf16.msra.mxu1 %v1377_v11 }
 0x2a1   : > { %v1350_v20 = vadd.f32 %v1882_v15, %v1301_v59  ;;  %1858 = vmatprep.subr.bf16.mxu1 %v2131_v27  ;;  %v1365_v4 = vmax.f32 %v1349_v16, 0.0 }
 0x2a2   : > { %v1348_v21 = vadd.f32 %v1883_v19, %v1291_v49  ;;  %v1363_v24 = vmax.f32 %v1347_v18, 0.0  ;;  %v1331_v49 = vpop.permute.xlu0 %1330 }
 0x2a3   : > { %v1366_v23 = vmax.f32 %v1350_v20, 0.0 }
 0x2a4   : > { %v1364_v25 = vmax.f32 %v1348_v21, 0.0  ;;  %v1850_v26 = vpop.f32.mrb[8].mxu0  ;;  %1859 = vmatpush3.bf16.msra.mxu1 %v1378_v7  ;;  %v2036_v7 = vld [vmem:[#allocation2] sm:$0xff]  }
 0x2a5   : > { %v1380_v28 = vpack.c.bf16 %v1366_v23, %v1365_v4  ;;  %v1884_v29 = vadd.f32 %v1850_v26, %v1814_v36  ;;  %v1200_v30 = vpop.f32.mrb[9].mxu0  ;;  %1860 = vmatprep.subr.bf16.mxu1 %v2131_v27 }
 0x2a6   : > { %v1379_v31 = vpack.c.bf16 %v1364_v25, %v1363_v24  ;;  %v1885_v32 = vadd.f32 %v1200_v30, %v820_v37  ;;  %v1851_v33 = vpop.f32.mrb[10].mxu0  ;;  %v1341_v62 = vpop.permute.xlu0 %1340 }
 0x2a7   : > { %v1886_v34 = vadd.f32 %v1851_v33, %v2504_v38  ;;  %v1353_v35 = vadd.f32 %v1884_v29, %v1316_v22  ;;  %v1203_v44 = vpop.f32.mrb[11].mxu0 }
 0x2a8   : > { %v1351_v45 = vadd.f32 %v1885_v32, %v1306_v6  ;;  %v1887_v46 = vadd.f32 %v1203_v44, %v2506_v39  ;;  %1861 = vmatpush3.bf16.msra.mxu1 %v1379_v31 }
 0x2a9   : > { %v1354_v48 = vadd.f32 %v1886_v34, %v1321_v12  ;;  %1862 = vmatprep.subr.bf16.mxu1 %v2131_v27  ;;  %v1369_v51 = vmax.f32 %v1353_v35, 0.0 }
 0x2aa   : > { %v1352_v36 = vadd.f32 %v1887_v46, %v1311_v10  ;;  %v1367_v52 = vmax.f32 %v1351_v45, 0.0  ;;  %v1395_v11 = vpop.permute.xlu0 %1394 }
 0x2ab   : > { %v1370_v50 = vmax.f32 %v1354_v48, 0.0 }
 0x2ac   : > { %v1368_v53 = vmax.f32 %v1352_v36, 0.0  ;;  %v1854_v37 = vpop.f32.mrb[12].mxu0  ;;  %1863 = vmatpush3.bf16.msra.mxu1 %v1380_v28 }
 0x2ad   : > { %v1382_v54 = vpack.c.bf16 %v1370_v50, %v1369_v51  ;;  %v1888_v38 = vadd.f32 %v1854_v37, %v2508_v40  ;;  %v1216_v55 = vpop.f32.mrb[13].mxu0  ;;  %1864 = vmatprep.subr.bf16.mxu1 %v2131_v27 }
 0x2ae   : > { %v1381_v39 = vpack.c.bf16 %v1368_v53, %v1367_v52  ;;  %v1889_v56 = vadd.f32 %v1216_v55, %v2510_v41  ;;  %v1855_v57 = vpop.f32.mrb[14].mxu0 }
 0x2af   : > { %v1890_v59 = vadd.f32 %v1855_v57, %v2512_v42  ;;  %v1357_v60 = vadd.f32 %v1888_v38, %v1336_v58  ;;  %v1219_v61 = vpop.f32.mrb[15].mxu0 }
 0x2b0   : > { %v1355_v63 = vadd.f32 %v1889_v56, %v1326_v47  ;;  %v1891_v0 = vadd.f32 %v1219_v61, %v2514_v43  ;;  %1865 = vmatpush3.bf16.msra.mxu1 %v1381_v39  ;;  %v1390_v43 = vpop.permute.xlu1 %1389 }
 0x2b1   : > { %v1358_v1 = vadd.f32 %v1890_v59, %v1341_v62  ;;  %1866 = vmatprep.subr.bf16.mxu1 %v2131_v27  ;;  %v1373_v3 = vmax.f32 %v1357_v60, 0.0 }
 0x2b2   : > { %v1356_v40 = vadd.f32 %v1891_v0, %v1331_v49  ;;  %v1371_v5 = vmax.f32 %v1355_v63, 0.0 }
 0x2b3   : > { %v1374_v2 = vmax.f32 %v1358_v1, 0.0 }
 0x2b4   : > { %v1372_v41 = vmax.f32 %v1356_v40, 0.0  ;;  %1867 = vmatpush3.bf16.msra.mxu1 %v1382_v54 }
 0x2b5   : > { %v1384_v6 = vpack.c.bf16 %v1374_v2, %v1373_v3  ;;  %1868 = vmatprep.subr.bf16.mxu1 %v2131_v27 }
 0x2b6   : > { %v1383_v42 = vpack.c.bf16 %v1372_v41, %v1371_v5 }
 0x2b8   : > { %1869 = vmatpush3.bf16.msra.mxu1 %v1383_v42 }
 0x2b9   : > { %1870 = vmatprep.subr.bf16.mxu1 %v2131_v27 }
 0x2bc   : > { %1871 = vmatpush3.bf16.msra.mxu1 %v1384_v6 }
 0x2bf   : > { %1873 = vmatmul.mubr.bf16.vlgmr.msra.gmra.mrb[16].mxu1 %v2036_v7 }
 0x391   : > { %1452 = sbr.rel (!%p2589_p11) target bundleno = 928 (0x3a0), region = 64 }
 0x392   : > { %v1437_v8 = vpop.f32.mrb[16].mxu1 }
 0x393   : > { %v1438_v9 = vadd.f32 %v1437_v8, %v1390_v43  ;;  %v1874_v10 = vpop.f32.mrb[17].mxu1 }
 0x394   : > { %v1440_v13 = vpop.f32.mrb[18].mxu1 }
 0x395   : > { %1444 = vst [vmem:[%s409_s26] sm:$0xff] %v1438_v9  ;;  %v1441_v14 = vadd.f32 %v1440_v13, %v1395_v11  ;;  %v1875_v15 = vpop.f32.mrb[19].mxu1 }
 0x397   : > { %1445 = vst [vmem:[%s409_s26 + $0x8] sm:$0xff] %v1441_v14 }
 0x39c   : > { %v1486_v27 = vld [vmem:[%s409_s26] sm:$0xff] }
 0x39d   : > { %1487 = vst [vmem:[%s1456_s27] sm:$0xff] %v1486_v27 }
 0x39e   : > { %v1488_v16 = vld [vmem:[%s409_s26 + $0x8] sm:$0xff] }
 0x39f   : > { %1489 = vst [vmem:[%s1456_s27 + $0x10] sm:$0xff] %v1488_v16 }
 0x3a0 PF: > { %s20_s15 = sadd.s32 1, %s2123_s15   ;;  %s2590_s12 = sld [smem:[#allocation6_spill]] }
 0x3a1   : > { %p17_p13 = scmp.ge.s32.totalorder %s20_s15, 6   ;;  %s2591_s21 = sld [smem:[#allocation7_spill]] }
 0x3a2   : > { %s2592_s14 = sld [smem:[#allocation8_spill]]  ;;  %s2593_s30 = smov %s2103_s10 }
 0x3a3   : > { %s2594_s10 = smov %s2256_s29  ;;  %s2595_s11 = smov %s2115_s13 }
 0x3a4   :  { %19 = sbr.rel (!%p17_p13) target bundleno = 8 (0x8), region = 138 }
 0x3a7   : > { %s2596_s13 = smov %s2591_s21 }
 0x3ab   :  { %1505 = vsyncpa [#allocation3], 1 }
 0x3ac   :  { %1507 = vsyncpa [#allocation3 + $0x1], 1 }

</bundles_post_ra>
